<compile_context>
chip_gen: v7x
topology: tpu7x:2x2x1
jax: 0.10.0
libtpu: 0.0.40
codegen_flags: <defaults>
</compile_context>

<pallas_src>
import functools

import jax
import jax.numpy as jnp
from jax import lax
from jax.experimental import pallas as pl
from jax.experimental.pallas import tpu as pltpu


def _round_up(x, m):
    return (x + m - 1) // m * m


def _cdiv(a, b):
    return (a + b - 1) // b


def _vmem_capacity_bytes():
    try:
        return int(pltpu.get_tpu_info().vmem_capacity_bytes)
    except Exception:
        return 64 * 1024 * 1024  # conservative: v7x per-TC capacity


def _clamp_vmem_limit(need_bytes):
    cap = _vmem_capacity_bytes()
    return int(min(int(cap * 0.92), max(2 * need_bytes, 16 * 1024 * 1024)))


def _pick_tile_n(n, d, itemsize, tile_n_max=None):
    """Row-tile size: as large as VMEM allows (<=4096), near-divisor of n."""
    cap = _vmem_capacity_bytes()
    # Projection kernel is the heaviest VMEM user: x, p, out double-buffered
    # (charged at f32 width to cover compiler temporaries) plus (d, d) blocks.
    budget = int(cap * 0.7) - 3 * d * d * 4
    per_row = 6 * d * max(int(itemsize), 4)
    by_vmem = budget // per_row if budget > 0 else 8
    cap_tile = max(8, min(4096, int(by_vmem)))
    if tile_n_max is not None:
        cap_tile = min(cap_tile, max(8, int(tile_n_max)))
    cap_tile = min(cap_tile, _round_up(n, 8))
    cap_tile = max(8, (cap_tile // 8) * 8)
    # Snap to a near-divisor of n so the last tile is nearly full.
    n_tiles = _cdiv(n, cap_tile)
    tile_n = _round_up(_cdiv(n, n_tiles), 8)
    return min(tile_n, cap_tile)


# ----------------------------------------------------------------------------
# Kernel 1 (tiled reduction, split over 2 "cores"):
#   gram[c] += mask(x_tile + p_tile)^T @ mask(x_tile + p_tile)
# ----------------------------------------------------------------------------
def _add_gram_kernel(x_ref, p_ref, gram_ref, *, tile_n, tiles_per_core,
                     n_rows, need_mask):
    i = pl.program_id(1)

    @pl.when(i == 0)
    def _init():
        gram_ref[...] = jnp.zeros_like(gram_ref)

    pv = x_ref[...].astype(jnp.float32) + p_ref[...].astype(jnp.float32)
    if need_mask:
        start = (pl.program_id(0) * tiles_per_core + i) * tile_n
        rows = lax.broadcasted_iota(jnp.int32, pv.shape, 0) + start
        pv = jnp.where(rows < n_rows, pv, 0.0)
    gram_ref[...] += lax.dot_general(                 # PV_tile^T @ PV_tile (MXU)
        pv, pv,
        dimension_numbers=(((0,), (0,)), ((), ())),
        preferred_element_type=jnp.float32)


def add_and_gram(x, p, *, tile_n, num_splits=2):
    n, d = x.shape
    n_tiles = _cdiv(n, tile_n)
    tiles_per_core = _cdiv(n_tiles, num_splits)
    need_mask = num_splits * tiles_per_core * tile_n != n
    clamp_idx = num_splits * tiles_per_core > n_tiles

    def row_map(c, i):
        blk = c * tiles_per_core + i
        if clamp_idx:                                  # duplicate tile; fully masked
            blk = jnp.minimum(blk, n_tiles - 1)
        return (blk, 0)

    kernel = functools.partial(_add_gram_kernel, tile_n=tile_n,
                               tiles_per_core=tiles_per_core, n_rows=n,
                               need_mask=need_mask)
    in_b = max(int(x.dtype.itemsize), 4)
    need = 4 * tile_n * d * in_b + 3 * d * d * 4
    cost = pl.CostEstimate(flops=2 * n * d * d, transcendentals=0,
                           bytes_accessed=2 * n * d * int(x.dtype.itemsize)
                           + num_splits * d * d * 4)
    return pl.pallas_call(
        kernel,
        out_shape=jax.ShapeDtypeStruct((num_splits, d, d), jnp.float32),
        grid_spec=pltpu.PrefetchScalarGridSpec(
            num_scalar_prefetch=0,
            grid=(num_splits, tiles_per_core),
            in_specs=[
                pl.BlockSpec((tile_n, d), row_map),
                pl.BlockSpec((tile_n, d), row_map),
            ],
            out_specs=pl.BlockSpec((None, d, d), lambda c, i: (c, 0, 0)),
        ),
        compiler_params=pltpu.CompilerParams(
            dimension_semantics=("parallel", "arbitrary"),
            vmem_limit_bytes=_clamp_vmem_limit(need)),
        cost_estimate=cost,
    )(x, p)


# ----------------------------------------------------------------------------
# Kernel 2 (tiny, single-shot): M = V @ diag(clamp(w)^-1/2) @ V^T
# ----------------------------------------------------------------------------
def _inv_sqrt_kernel(w_ref, v_ref, m_ref):
    w = w_ref[...]                                    # (1, d) eigenvalues
    v = v_ref[...]                                    # (d, d) eigenvectors (columns)
    floor = jnp.maximum(jnp.max(w) * 1e-12, 1e-30)    # guard rank deficiency / round-off
    w = jnp.maximum(w, floor)
    scaled = v * lax.rsqrt(w)                         # scale column j by w_j^{-1/2}
    m_ref[...] = lax.dot_general(                     # scaled @ V^T without XLU transpose
        scaled, v,
        dimension_numbers=(((1,), (1,)), ((), ())),
        preferred_element_type=jnp.float32)


def inverse_sqrt_from_eig(w_row, v):
    d = v.shape[0]
    need = 4 * d * d * 4
    return pl.pallas_call(
        _inv_sqrt_kernel,
        out_shape=jax.ShapeDtypeStruct((d, d), jnp.float32),
        in_specs=[
            pl.BlockSpec(memory_space=pltpu.MemorySpace.VMEM),
            pl.BlockSpec(memory_space=pltpu.MemorySpace.VMEM),
        ],
        out_specs=pl.BlockSpec(memory_space=pltpu.MemorySpace.VMEM),
        compiler_params=pltpu.CompilerParams(
            vmem_limit_bytes=_clamp_vmem_limit(need)),
    )(w_row, v)


# ----------------------------------------------------------------------------
# Kernel 3 (tiled, parallel over row tiles): out_tile = (x_tile + p_tile) @ M
# ----------------------------------------------------------------------------
def _project_kernel(x_ref, p_ref, m_ref, out_ref, *, use_bf16):
    pv = x_ref[...].astype(jnp.float32) + p_ref[...].astype(jnp.float32)
    m = m_ref[...]
    if use_bf16:                                      # MXU-edge cast (f32 accumulate)
        pv = pv.astype(jnp.bfloat16)
        m = m.astype(jnp.bfloat16)
    out = jnp.dot(pv, m, preferred_element_type=jnp.float32)
    out_ref[...] = out.astype(out_ref.dtype)


def project(x, p, m, *, tile_n, out_dtype, use_bf16_mxu):
    n, d = x.shape
    n_tiles = _cdiv(n, tile_n)
    in_b = max(int(x.dtype.itemsize), 4)
    out_b = int(jnp.dtype(out_dtype).itemsize)
    need = 4 * tile_n * d * in_b + 2 * tile_n * d * out_b + 3 * d * d * 4
    cost = pl.CostEstimate(flops=2 * n * d * d, transcendentals=0,
                           bytes_accessed=2 * n * d * int(x.dtype.itemsize)
                           + n * d * out_b + d * d * 4)
    kernel = functools.partial(_project_kernel, use_bf16=use_bf16_mxu)
    return pl.pallas_call(
        kernel,
        out_shape=jax.ShapeDtypeStruct((n, d), out_dtype),
        grid_spec=pltpu.PrefetchScalarGridSpec(
            num_scalar_prefetch=0,
            grid=(n_tiles,),
            in_specs=[
                pl.BlockSpec((tile_n, d), lambda i: (i, 0)),
                pl.BlockSpec((tile_n, d), lambda i: (i, 0)),
                pl.BlockSpec((d, d), lambda i: (0, 0)),
            ],
            out_specs=pl.BlockSpec((tile_n, d), lambda i: (i, 0)),
        ),
        compiler_params=pltpu.CompilerParams(
            dimension_semantics=("parallel",),        # shards across TCs on v7x
            vmem_limit_bytes=_clamp_vmem_limit(need)),
        cost_estimate=cost,
    )(x, p, m)


# ----------------------------------------------------------------------------
# Module wrapper (equivalent of Retraction.forward)
# ----------------------------------------------------------------------------
class Retraction:
    def __init__(self, lr, tile_n=None, gram_splits=2, bf16_mxu_min_d=512):
        # beta (= lr) is stored but unused in forward, matching the PyTorch module.
        self.beta = lr
        self.tile_n = tile_n              # None -> auto-size from VMEM capacity
        self.gram_splits = gram_splits    # leading parallel axis of the Gram kernel
        self.bf16_mxu_min_d = bf16_mxu_min_d

    def __call__(self, inputs, P):
        x = jnp.asarray(inputs)
        p = jnp.asarray(P)
        assert x.ndim == 2 and x.shape == p.shape
        n, d = x.shape
        tile_n = _pick_tile_n(n, d, x.dtype.itemsize, self.tile_n)

        partials = add_and_gram(x, p, tile_n=tile_n, num_splits=self.gram_splits)
        gram = partials.sum(axis=0)        # tiny (splits, d, d) reduce in plain JAX

        # TODO(synk): symmetric eigendecomposition (EigLayer) has no Pallas
        # equivalent; computed with jnp.linalg.eigh in plain JAX glue.
        w, v = jnp.linalg.eigh(gram)

        m = inverse_sqrt_from_eig(w.reshape(1, d).astype(jnp.float32),
                                  v.astype(jnp.float32))

        use_bf16 = d >= self.bf16_mxu_min_d
        return project(x, p, m, tile_n=tile_n, out_dtype=x.dtype,
                       use_bf16_mxu=use_bf16)


# ----------------------------------------------------------------------------
# Demo / self-check
# ----------------------------------------------------------------------------
def _reference(inputs, P):
    pv = inputs + P
    gram = pv.T @ pv
    w, v = jnp.linalg.eigh(gram)
    m = (v * (w ** -0.5)[None, :]) @ v.T
    return pv @ m


if __name__ == "__main__":
    key = jax.random.PRNGKey(0)
    k1, k2 = jax.random.split(key)
    n, d = 500, 32                                    # tall Stiefel point; n % tile_n != 0
    inputs = jax.random.normal(k1, (n, d), dtype=jnp.float32)
    P = 0.01 * jax.random.normal(k2, (n, d), dtype=jnp.float32)

    # tile_n=128 so the demo exercises a multi-step grid, the 2-way core split
    # and the masked partial last row tile.
    retraction = Retraction(lr=0.1, tile_n=128)
    out = jax.block_until_ready(retraction(inputs, P))

    ref = _reference(inputs, P)
    assert out.shape == (n, d)
    assert out.dtype == inputs.dtype
    assert bool(jnp.all(jnp.isfinite(out)))
    assert jnp.allclose(out, ref, rtol=1e-3, atol=1e-3)
    # Retraction output should be (approximately) orthonormal: out^T out ~ I
    assert jnp.allclose(out.T @ out, jnp.eye(d), atol=1e-2)

    print("KERNEL_OK")
</pallas_src>

<mosaic_0001>
module attributes {stable_mosaic.version = 11 : i64} {
  func.func @_add_gram_kernel(%arg0: i32, %arg1: i32, %arg2: memref<128x32xf32, #tpu.memory_space<vmem>>, %arg3: memref<128x32xf32, #tpu.memory_space<vmem>>, %arg4: memref<1x32x32xf32, #tpu.memory_space<vmem>>) attributes {dimension_semantics = [#tpu.dimension_semantics<parallel>, #tpu.dimension_semantics<arbitrary>], iteration_bounds = array<i64: 2, 2>, scalar_prefetch = 0 : i64, scratch_operands = 0 : i64, tpu.core_type = #tpu.core_type<tc>, window_params = [{transform_indices = @transform_0, window_bounds = array<i64: 128, 32>}, {transform_indices = @transform_1, window_bounds = array<i64: 128, 32>}, {transform_indices = @transform_2, window_bounds = array<i64: 1, 32, 32>}]} {
    %c0_i32 = arith.constant 0 : i32
    %0 = arith.cmpi eq, %arg1, %c0_i32 : i32
    %1 = arith.extui %0 : i1 to i32
    %c0_i32_0 = arith.constant 0 : i32
    %2 = arith.cmpi ne, %1, %c0_i32_0 : i32
    scf.if %2 {
      %cst_11 = arith.constant 0.000000e+00 : f32
      %23 = vector.broadcast %cst_11 : f32 to vector<32x32xf32>
      %c0_12 = arith.constant 0 : index
      %c0_13 = arith.constant 0 : index
      %c0_14 = arith.constant 0 : index
      %24 = vector.load %arg4[%c0_12, %c0_13, %c0_14] : memref<1x32x32xf32, #tpu.memory_space<vmem>>, vector<1x32x32xf32>
      %25 = vector.shape_cast %24 : vector<1x32x32xf32> to vector<32x32xf32>
      %26 = vector.shape_cast %23 : vector<32x32xf32> to vector<1x32x32xf32>
      tpu.vector_store %arg4[%c0_12, %c0_13, %c0_14], %26 {strides = array<i32>} : memref<1x32x32xf32, #tpu.memory_space<vmem>>, vector<1x32x32xf32>,
    } else {
    }
    %c0 = arith.constant 0 : index
    %c0_1 = arith.constant 0 : index
    %3 = vector.load %arg2[%c0, %c0_1] : memref<128x32xf32, #tpu.memory_space<vmem>>, vector<128x32xf32>
    %c0_2 = arith.constant 0 : index
    %c0_3 = arith.constant 0 : index
    %4 = vector.load %arg3[%c0_2, %c0_3] : memref<128x32xf32, #tpu.memory_space<vmem>>, vector<128x32xf32>
    %5 = arith.addf %3, %4 : vector<128x32xf32>
    %c2_i32 = arith.constant 2 : i32
    %6 = arith.muli %arg0, %c2_i32 : i32
    %7 = arith.addi %6, %arg1 : i32
    %c128_i32 = arith.constant 128 : i32
    %8 = arith.muli %7, %c128_i32 : i32
    %9 = tpu.iota {dimensions = array<i32: 0>} : vector<128x32xi32>
    %10 = vector.broadcast %8 : i32 to vector<128x32xi32>
    %11 = arith.addi %9, %10 : vector<128x32xi32>
    %c500_i32 = arith.constant 500 : i32
    %12 = vector.broadcast %c500_i32 : i32 to vector<128x32xi32>
    %13 = arith.cmpi slt, %11, %12 : vector<128x32xi32>
    %cst = arith.constant 0.000000e+00 : f32
    %14 = vector.broadcast %cst : f32 to vector<128x32xf32>
    %15 = arith.select %13, %5, %14 : vector<128x32xi1>, vector<128x32xf32>
    %c0_4 = arith.constant 0 : index
    %c0_5 = arith.constant 0 : index
    %c0_6 = arith.constant 0 : index
    %16 = vector.load %arg4[%c0_4, %c0_5, %c0_6] : memref<1x32x32xf32, #tpu.memory_space<vmem>>, vector<1x32x32xf32>
    %17 = vector.shape_cast %16 : vector<1x32x32xf32> to vector<32x32xf32>
    %cst_7 = arith.constant dense<0.000000e+00> : vector<32x32xf32>
    %18 = tpu.matmul %15, %15, %cst_7 {dimension_numbers = #tpu.dot_dimension_numbers<[0], [0], [1], [1], [0, 1, 1, 1], [], []>} : vector<128x32xf32>, vector<128x32xf32>, vector<32x32xf32> -> vector<32x32xf32>
    %19 = arith.addf %17, %18 : vector<32x32xf32>
    %c0_8 = arith.constant 0 : index
    %c0_9 = arith.constant 0 : index
    %c0_10 = arith.constant 0 : index
    %20 = vector.load %arg4[%c0_8, %c0_9, %c0_10] : memref<1x32x32xf32, #tpu.memory_space<vmem>>, vector<1x32x32xf32>
    %21 = vector.shape_cast %20 : vector<1x32x32xf32> to vector<32x32xf32>
    %22 = vector.shape_cast %19 : vector<32x32xf32> to vector<1x32x32xf32>
    tpu.vector_store %arg4[%c0_8, %c0_9, %c0_10], %22 {strides = array<i32>} : memref<1x32x32xf32, #tpu.memory_space<vmem>>, vector<1x32x32xf32>,
    return
  }
  func.func @transform_0(%arg0: i32, %arg1: i32) -> (i32, i32) {
    %c2_i32 = arith.constant 2 : i32
    %0 = arith.muli %arg0, %c2_i32 : i32
    %1 = arith.addi %0, %arg1 : i32
    %c0_i32 = arith.constant 0 : i32
    %c0_i32_0 = arith.constant 0 : i32
    return %1, %c0_i32 : i32, i32
  }
  func.func @transform_1(%arg0: i32, %arg1: i32) -> (i32, i32) {
    %c2_i32 = arith.constant 2 : i32
    %0 = arith.muli %arg0, %c2_i32 : i32
    %1 = arith.addi %0, %arg1 : i32
    %c0_i32 = arith.constant 0 : i32
    %c0_i32_0 = arith.constant 0 : i32
    return %1, %c0_i32 : i32, i32
  }
  func.func @transform_2(%arg0: i32, %arg1: i32) -> (i32, i32, i32) {
    %c0_i32 = arith.constant 0 : i32
    %c0_i32_0 = arith.constant 0 : i32
    %c0_i32_1 = arith.constant 0 : i32
    return %arg0, %c0_i32, %c0_i32_0 : i32, i32, i32
  }
}

</mosaic_0001>

<bundles_post_ra>
// kernel: tpu_custom_call.1
= control target key start
LH: loop header
LB: loop body
LE: loop exit
PB: predicated region body
PF: predicated region fallthrough
CT: control target
= control target key end

     0   :  { %7 = vsyncpa [#allocation3], 0  ;;  %s1361_s0 = inlined_call_operand.vmem [shape: f32[500,32], index: 0, kind: input, shape index: {}]   ;;  %s1362_s1 = inlined_call_operand.vmem [shape: f32[500,32], index: 1, kind: input, shape index: {}]   ;;  %s1363_s2 = inlined_call_operand.hbm [shape: f32[2,32,32], index: 2, kind: output, shape index: {}]  }
   0x1   :  { %9 = vsyncpa [#allocation3 + $0x1], 0  ;;  %s953_s9 = smov 0   ;;  %s955_s10 = smov 0  }
   0x2   :  { %s957_s11 = smov 0   ;;  %s959_s12 = smov 0  }
   0x3   :  { %s961_s13 = smov 0   ;;  %s963_s14 = smov 0  }
   0x4   :  { %s965_s15 = smov 0   ;;  %s967_s16 = smov 0  }
   0x5 LB: > { %s601_s17 = sadd.s32 4294967295, %s932_s16   ;;  %s602_s18 = sadd.s32 4294967294, %s932_s16   ;;  %s932_s16 = sphi %s967_s16, %s15_s16   ;;  %s928_s15 = sphi %s965_s15, %s1384_s15   ;;  %s924_s14 = sphi %s963_s14, %s1383_s14   ;;  %s920_s13 = sphi %s961_s13, %s1382_s13   ;;  %s916_s12 = sphi %s959_s12, %s1381_s12   ;;  %s912_s11 = sphi %s957_s11, %s1380_s11   ;;  %s908_s10 = sphi %s955_s10, %s1379_s10   ;;  %s904_s9 = sphi %s953_s9, %s1378_s9  }
   0x6   : > { %s24_s19 = sadd.s32 1, %s924_s14  ;;  %s27_s20 = sadd.s32 1, %s928_s15 }
   0x7   : > { %p25_p0 = scmp.ge.s32.totalorder %s24_s19, 2  ;;  %p104_p1 = scmp.ne.s32.totalorder %s912_s11, %s908_s10 }
   0x8   : > { %p105_p2 = scmp.eq.s32.totalorder %s601_s17, 3  ;;  %p110_p4 = scmp.ne.s32.totalorder %s908_s10, %s904_s9 }
   0x9   : > { %s1386_s19 = smov (%p25_p0, %s24_s19), 0  ;;  %s1388_s20 = smov (!%p25_p0, %s27_s20), %s928_s15 }
   0xa   : > { %p1002_p3 = por %p105_p2, %p104_p1  ;;  %p29_p5 = scmp.ge.s32.totalorder %s1388_s20, 2 }
   0xb   : > { %p111_p6 = scmp.eq.s32.totalorder %s602_s18, 3  ;;  %p609_p7 = scmp.ge.s32.totalorder %s932_s16, 1 }
   0xc   : > { %p171_p8 = scmp.lt.s32.totalorder %s932_s16, 5  ;;  %s1390_s20 = smov (%p29_p5, %s1388_s20), 0 }
   0xd   : > { %p1012_p9 = por %p111_p6, %p110_p4  ;;  %s91_s23 = ssub.s32 %s928_s15, %s1390_s20 }
   0xe   : > { %p172_p10 = pnand %p609_p7, %p171_p8  ;;  %s94_s24 = sadd.s32 1, %s912_s11 }
   0xf   : > { %p92_p11 = scmp.eq.s32.totalorder %s91_s23, 0  ;;  %s207_s26 = sand.u32 (!%p172_p10), 1, %s908_s10  }
  0x10   : > { %175 = sbr.rel (%p172_p10) target bundleno = 409 (0x199), region = 28  ;;  %s611_s27 = sshll.u32 (!%p172_p10), %s920_s13, 1 }
  0x11   : > { %s1020_s25 = scalar_select %p92_p11, %s912_s11, %s94_s24  }
  0x12   : > { %s610_s28 = sshll.u32 (!%p172_p10), %s207_s26, 5  ;;  %s211_s29 = sadd.s32 (!%p172_p10), %s916_s12, %s611_s27 }
  0x13   : > { %s612_s30 = sshll.u32 (!%p172_p10), %s211_s29, 4  ;;  %s1037_s18 = scalar_lea.vmem (!%p172_p10), [#allocation2], %s610_s28 }
  0x14   : > { %p217_p12 = scmp.lt.s32.totalorder (!%p172_p10), %s612_s30, 62  ;;  %p617_p13 = scmp.ne.s32.totalorder (!%p172_p10), %s916_s12, 0 }
  0x17   : > { %s1392_s30 = smov (!%p217_p12, %s612_s30), 62  ;;  %249 = sbr.rel (%p617_p13) target bundleno = 30 (0x1e), region = 32 }
  0x18   : > { %s613_s3 = sshll.u32 %s1392_s30, 3  ;;  %vm250_vm0 = vcmask (!%p617_p13), 261120   ;;  %v934_v0 = vmov (!%p617_p13), 0.0  }
  0x19   : > { %s1030_s6 = scalar_lea.vmem %s1361_s0, %s613_s3  ;;  %s1035_s17 = scalar_lea.vmem %s1362_s1, %s613_s3  ;;  %251 = vst.msk [vmem:[%s1037_s18] sm:$0xff] (!%p617_p13), %vm250_vm0, %v934_v0  ;;  %252 = vst.msk [vmem:[%s1037_s18 + $0x8] sm:$0xff] (!%p617_p13), %vm250_vm0, %v934_v0 }
  0x1a   : > { %253 = vst.msk [vmem:[%s1037_s18 + $0x10] sm:$0xff] (!%p617_p13), %vm250_vm0, %v934_v0  ;;  %254 = vst.msk [vmem:[%s1037_s18 + $0x18] sm:$0xff] (!%p617_p13), %vm250_vm0, %v934_v0 }
  0x1e PF: > { %v255_v1 = vld [vmem:[%s1030_s6] sm:$0xff]  ;;  %s619_s12 = sshll.u32 %s211_s29, 7  ;;  %v306_v3 = vlaneseq  ;;  %v256_v5 = vld [vmem:[%s1030_s6 + $0x8] sm:$0xff]  ;;  %v257_v7 = vld [vmem:[%s1030_s6 + $0x10] sm:$0xff]  ;;  %s641_s23 = sshll.u32 %s920_s13, 9 }
  0x1f   : > { %v271_v2 = vld [vmem:[%s1035_s17] sm:$0xff]  ;;  %v1046_v4 = vstv %s619_s12  ;;  %v272_v6 = vld [vmem:[%s1035_s17 + $0x8] sm:$0xff]  ;;  %v273_v9 = vld [vmem:[%s1035_s17 + $0x10] sm:$0xff]  ;;  %s516_s24 = sshll.u32 %s1037_s18, 4  ;;  %s1299_s29 = scalar_lea.hbm %s1363_s2, %s641_s23  ;;  %s1301_s24 = int_to_ptr.vmem [resolvable:$true] %s516_s24 }
  0x20   : > { %v1051_v8 = vshrl.u32 %v306_v3, 7  ;;  %v258_v10 = vld [vmem:[%s1030_s6 + $0x18] sm:$0xff]  ;;  %v287_v12 = vadd.f32 %v271_v2, %v255_v1  ;;  %v288_v14 = vadd.f32 %v272_v6, %v256_v5  ;;  %v289_v17 = vadd.f32 %v273_v9, %v257_v7  ;;  %v259_v20 = vld [vmem:[%s1030_s6 + $0x20] sm:$0xff]  ;;  %v260_v26 = vld [vmem:[%s1030_s6 + $0x28] sm:$0xff]  ;;  %s1309_s13 = scalar_lea.sflag [#allocation3], %s207_s26  ;;  %s838_s30 = scalar_lea.vmem %s1301_s24, 512 }
  0x21   : > { %v274_v11 = vld [vmem:[%s1035_s17 + $0x18] sm:$0xff]  ;;  %v275_v21 = vld [vmem:[%s1035_s17 + $0x20] sm:$0xff]  ;;  %v276_v27 = vld [vmem:[%s1035_s17 + $0x28] sm:$0xff]  ;;  %p839_p0 = scmp.ne.s32.totalorder %s1301_s24, %s838_s30  ;;  %s935_s3 = smov [#allocation2]  }
  0x22   : > { %v324_v13 = vadd.s32 %v1046_v4, %v1051_v8  ;;  %v308_v15 = vadd.s32 8, %v1051_v8  ;;  %v309_v16 = vadd.s32 16, %v1051_v8  ;;  %v1060_v18 = vadd.f32 %v274_v11, %v258_v10  ;;  %v261_v39 = vld [vmem:[%s1030_s6 + $0x30] sm:$0xff]  ;;  %v262_v43 = vld [vmem:[%s1030_s6 + $0x38] sm:$0xff]  ;;  %v263_v52 = vld [vmem:[%s1030_s6 + $0x40] sm:$0xff]  ;;  %s842_s4 = sshll.u32 %s935_s3, 4  ;;  %s843_s4 = int_to_ptr.vmem [resolvable:$false] %s842_s4 }
  0x23   : > { %v310_v19 = vadd.s32 24, %v1051_v8  ;;  %v311_v22 = vadd.s32 32, %v1051_v8  ;;  %v700_v24 = vpack.c.bf16 %v288_v14, %v287_v12  ;;  %v312_v30 = vadd.s32 40, %v1051_v8  ;;  %v277_v42 = vld [vmem:[%s1035_s17 + $0x30] sm:$0xff]  ;;  %v278_v44 = vld [vmem:[%s1035_s17 + $0x38] sm:$0xff]  ;;  %v279_v55 = vld [vmem:[%s1035_s17 + $0x40] sm:$0xff]  ;;  %p840_p1 = pnand %p839_p0, %p1002_p3  ;;  %p845_p4 = scmp.lt.s32.totalorder %s1301_s24, %s843_s4 }
  0x24   : > { %vm340_vm1 = vcmp.lt.s32.totalorder %v324_v13, 500  ;;  %v325_v23 = vadd.s32 %v1046_v4, %v308_v15  ;;  %v326_v25 = vadd.s32 %v1046_v4, %v309_v16  ;;  %v706_v31 = vpack.c.bf16 %v1060_v18, %v289_v17  ;;  %v264_v56 = vld [vmem:[%s1030_s6 + $0x48] sm:$0xff]  ;;  %v265_v2 = vld [vmem:[%s1030_s6 + $0x50] sm:$0xff]  ;;  %v266_v6 = vld [vmem:[%s1030_s6 + $0x58] sm:$0xff]  ;;  %s844_s5 = scalar_lea.vmem %s843_s4, 1024 }
  0x25   : > { %v356_v28 = vsel %vm340_vm1, %v287_v12, 0.0  ;;  %v327_v29 = vadd.s32 %v1046_v4, %v310_v19  ;;  %v1074_v32 = vadd.f32 %v275_v21, %v259_v20  ;;  %v1077_v33 = vadd.s32 %v1046_v4, %v311_v22  ;;  %v280_v57 = vld [vmem:[%s1035_s17 + $0x48] sm:$0xff]  ;;  %v281_v5 = vld [vmem:[%s1035_s17 + $0x50] sm:$0xff]  ;;  %v282_v7 = vld [vmem:[%s1035_s17 + $0x58] sm:$0xff]  ;;  %p841_p2 = pneg %p840_p1  ;;  %p846_p5 = scmp.lt.s32.totalorder %s844_s5, %s838_s30 }
  0x26   : > { %376 = vxpose.xlu0.b32.start [1/16] (narrow) %v356_v28, 32  ;;  %vm341_vm2 = vcmp.lt.s32.totalorder %v325_v23, 500  ;;  %vm342_vm4 = vcmp.lt.s32.totalorder %v326_v25, 500  ;;  %v1084_v36 = vadd.f32 %v276_v27, %v260_v26  ;;  %v1093_v38 = vadd.s32 %v1046_v4, %v312_v30  ;;  %v283_v19 = vld [vmem:[%s1035_s17 + $0x60] sm:$0xff]  ;;  %v268_v20 = vld [vmem:[%s1030_s6 + $0x68] sm:$0xff] }
  0x27   : > { %v357_v34 = vsel %vm341_vm2, %v288_v14, 0.0  ;;  %vm1080_vm3 = vmpackc.low %vm341_vm2, %vm340_vm1  ;;  %vm343_vm5 = vcmp.lt.s32.totalorder %v327_v29, 500  ;;  %v313_v40 = vadd.s32 48, %v1051_v8  ;;  %v314_v45 = vadd.s32 56, %v1051_v8  ;;  %v284_v21 = vld [vmem:[%s1035_s17 + $0x68] sm:$0xff]  ;;  %p847_p6 = por %p846_p5, %p845_p4 }
  0x28   : > { %vm1088_vm6 = vmpackc.low %vm343_vm5, %vm342_vm4  ;;  %702 = vmatprep.subr.msk.bf16.mxu0 %vm1080_vm3, %v700_v24  ;;  %748 = vmatprep.subr.msk.bf16.mxu1 %vm1080_vm3, %v700_v24  ;;  %v712_v41 = vpack.c.bf16 %v1084_v36, %v1074_v32  ;;  %v315_v46 = vadd.s32 64, %v1051_v8  ;;  %vm344_vm7 = vcmp.lt.s32.totalorder %v1077_v33, 500  ;;  %vm345_vm8 = vcmp.lt.s32.totalorder %v1093_v38, 500  ;;  %v270_v33 = vld [vmem:[%s1030_s6 + $0x78] sm:$0xff] }
  0x29   : > { %705 = vmatpush3.bf16.msk.msra.mxu0 %vm1080_vm3, %v700_v24  ;;  %756 = vmatpush3.bf16.msk.msra.mxu1 %vm1080_vm3, %v700_v24  ;;  %v1115_v47 = vadd.s32 %v1046_v4, %v313_v40  ;;  %v316_v48 = vadd.s32 72, %v1051_v8  ;;  %v358_v49 = vsel %vm342_vm4, %v289_v17, 0.0  ;;  %vm1125_vm9 = vmpackc.low %vm345_vm8, %vm344_vm7  ;;  %v1130_v51 = vadd.s32 %v1046_v4, %v314_v45  ;;  %p848_p7 = pnand %p847_p6, %p841_p2 }
  0x2a   : > { %377 = vxpose.xlu0.b32.cont [2/16] (narrow) %v357_v34, 32  ;;  %708 = vmatprep.subr.msk.bf16.mxu0 %vm1088_vm6, %v706_v31  ;;  %v1135_v53 = vadd.f32 %v277_v42, %v261_v39  ;;  %v1137_v54 = vadd.f32 %v278_v44, %v262_v43  ;;  %v1143_v58 = vadd.s32 %v1046_v4, %v315_v46  ;;  %v317_v59 = vadd.s32 80, %v1051_v8  ;;  %v286_v34 = vld [vmem:[%s1035_s17 + $0x78] sm:$0xff] }
  0x2b   : > { %749 = vmatprep.subr.msk.bf16.mxu1 %vm1088_vm6, %v706_v31  ;;  %vm346_vm10 = vcmp.lt.s32.totalorder %v1115_v47, 500  ;;  %vm347_vm11 = vcmp.lt.s32.totalorder %v1130_v51, 500  ;;  %v1155_v61 = vadd.s32 %v1046_v4, %v316_v48  ;;  %v359_v62 = vsel %vm343_vm5, %v1060_v18, 0.0  ;;  %v267_v18 = vld [vmem:[%s1030_s6 + $0x60] sm:$0xff] }
  0x2c   : > { %v718_v60 = vpack.c.bf16 %v1137_v54, %v1135_v53  ;;  %vm1165_vm12 = vmpackc.low %vm347_vm11, %vm346_vm10  ;;  %v1169_v0 = vadd.f32 %v279_v55, %v263_v52  ;;  %v1171_v1 = vadd.f32 %v280_v57, %v264_v56  ;;  %v318_v3 = vadd.s32 88, %v1051_v8 }
  0x2d   : > { %711 = vmatpush3.bf16.msk.msra.mxu0 %vm1088_vm6, %v706_v31  ;;  %757 = vmatpush3.bf16.msk.msra.mxu1 %vm1088_vm6, %v706_v31  ;;  %vm348_vm13 = vcmp.lt.s32.totalorder %v1143_v58, 500  ;;  %v1184_v10 = vadd.s32 %v1046_v4, %v317_v59  ;;  %vm349_vm14 = vcmp.lt.s32.totalorder %v1155_v61, 500  ;;  %v319_v12 = vadd.s32 96, %v1051_v8  ;;  %v375_v59 = vld [vmem:[%s1037_s18 + $0x18] sm:$0xff] }
  0x2e   : > { %378 = vxpose.xlu0.b32.cont [3/16] (narrow) %v358_v49, 32  ;;  %714 = vmatprep.subr.msk.bf16.mxu0 %vm1125_vm9, %v712_v41  ;;  %v724_v9 = vpack.c.bf16 %v1171_v1, %v1169_v0  ;;  %v1192_v11 = vadd.s32 %v1046_v4, %v318_v3  ;;  %v320_v13 = vadd.s32 104, %v1051_v8  ;;  %v360_v14 = vsel %vm344_vm7, %v1074_v32, 0.0  ;;  %vm1205_vm15 = vmpackc.low %vm349_vm14, %vm348_vm13  ;;  %v285_v32 = vld [vmem:[%s1035_s17 + $0x70] sm:$0xff] }
  0x2f   : > { %750 = vmatprep.subr.msk.bf16.mxu1 %vm1125_vm9, %v712_v41  ;;  %v297_v16 = vadd.f32 %v281_v5, %v265_v2  ;;  %v1209_v17 = vadd.f32 %v282_v7, %v266_v6  ;;  %vm350_vm0 = vcmp.lt.s32.totalorder %v1184_v10, 500  ;;  %v321_v23 = vadd.s32 112, %v1051_v8 }
  0x30   : > { %vm351_vm1 = vcmp.lt.s32.totalorder %v1192_v11, 500  ;;  %v336_v24 = vadd.s32 %v1046_v4, %v319_v12  ;;  %v337_v25 = vadd.s32 %v1046_v4, %v320_v13  ;;  %v322_v26 = vadd.s32 120, %v1051_v8  ;;  %v269_v8 = vld [vmem:[%s1030_s6 + $0x70] sm:$0xff] }
  0x31   : > { %717 = vmatpush3.bf16.msk.msra.mxu0 %vm1125_vm9, %v712_v41  ;;  %758 = vmatpush3.bf16.msk.msra.mxu1 %vm1125_vm9, %v712_v41  ;;  %v730_v22 = vpack.c.bf16 %v1209_v17, %v297_v16  ;;  %v361_v27 = vsel %vm345_vm8, %v1084_v36, 0.0  ;;  %vm1237_vm2 = vmpackc.low %vm351_vm1, %vm350_vm0  ;;  %v299_v29 = vadd.f32 %v283_v19, %v267_v18  ;;  %v300_v30 = vadd.f32 %v284_v21, %v268_v20 }
  0x32   : > { %379 = vxpose.xlu0.b32.cont [4/16] (narrow) %v359_v62, 32  ;;  %720 = vmatprep.subr.msk.bf16.mxu0 %vm1165_vm12, %v718_v60  ;;  %vm352_vm3 = vcmp.lt.s32.totalorder %v336_v24, 500  ;;  %vm353_vm4 = vcmp.lt.s32.totalorder %v337_v25, 500  ;;  %v338_v35 = vadd.s32 %v1046_v4, %v321_v23  ;;  %v339_v36 = vadd.s32 %v1046_v4, %v322_v26 }
  0x33   : > { %751 = vmatprep.subr.msk.bf16.mxu1 %vm1165_vm12, %v718_v60  ;;  %v736_v31 = vpack.c.bf16 %v300_v30, %v299_v29  ;;  %v362_v37 = vsel %vm346_vm10, %v1135_v53, 0.0  ;;  %vm737_vm5 = vmpackc.low %vm353_vm4, %vm352_vm3  ;;  %v301_v38 = vadd.f32 %v285_v32, %v269_v8  ;;  %v302_v39 = vadd.f32 %v286_v34, %v270_v33  ;;  %v373_v53 = vld [vmem:[%s1037_s18 + $0x8] sm:$0xff] }
  0x34   : > { %vm354_vm6 = vcmp.lt.s32.totalorder %v338_v35, 500  ;;  %vm355_vm7 = vcmp.lt.s32.totalorder %v339_v36, 500  ;;  %v363_v40 = vsel %vm347_vm11, %v1137_v54, 0.0  ;;  %v364_v41 = vsel %vm348_vm13, %v1169_v0, 0.0  ;;  %v372_v54 = vld [vmem:[%s1037_s18] sm:$0xff] }
  0x35   : > { %723 = vmatpush3.bf16.msk.msra.mxu0 %vm1165_vm12, %v718_v60  ;;  %759 = vmatpush3.bf16.msk.msra.mxu1 %vm1165_vm12, %v718_v60  ;;  %v742_v4 = vpack.c.bf16 %v302_v39, %v301_v38  ;;  %vm743_vm8 = vmpackc.low %vm355_vm7, %vm354_vm6  ;;  %v365_v42 = vsel %vm349_vm14, %v1171_v1, 0.0  ;;  %v366_v43 = vsel %vm350_vm0, %v297_v16, 0.0  ;;  %v367_v44 = vsel %vm351_vm1, %v1209_v17, 0.0  ;;  %v374_v60 = vld [vmem:[%s1037_s18 + $0x10] sm:$0xff] }
  0x36   : > { %380 = vxpose.xlu0.b32.cont [5/16] (narrow) %v360_v14, 32  ;;  %726 = vmatprep.subr.msk.bf16.mxu0 %vm1205_vm15, %v724_v9  ;;  %v368_v45 = vsel %vm352_vm3, %v299_v29, 0.0  ;;  %v369_v46 = vsel %vm353_vm4, %v300_v30, 0.0  ;;  %v370_v47 = vsel %vm354_vm6, %v301_v38, 0.0  ;;  %v371_v48 = vsel %vm355_vm7, %v302_v39, 0.0 }
  0x37   : > { %752 = vmatprep.subr.msk.bf16.mxu1 %vm1205_vm15, %v724_v9  ;;  %vm497_vm9 = vcmask 261120  }
  0x39   : > { %729 = vmatpush3.bf16.msk.msra.mxu0 %vm1205_vm15, %v724_v9  ;;  %760 = vmatpush3.bf16.msk.msra.mxu1 %vm1205_vm15, %v724_v9 }
  0x3a   : > { %381 = vxpose.xlu0.b32.cont [6/16] (narrow) %v361_v27, 32  ;;  %732 = vmatprep.subr.msk.bf16.mxu0 %vm1237_vm2, %v730_v22 }
  0x3b   : > { %753 = vmatprep.subr.msk.bf16.mxu1 %vm1237_vm2, %v730_v22 }
  0x3d   : > { %735 = vmatpush3.bf16.msk.msra.mxu0 %vm1237_vm2, %v730_v22  ;;  %761 = vmatpush3.bf16.msk.msra.mxu1 %vm1237_vm2, %v730_v22 }
  0x3e   : > { %382 = vxpose.xlu0.b32.cont [7/16] (narrow) %v362_v37, 32  ;;  %738 = vmatprep.subr.msk.bf16.mxu0 %vm737_vm5, %v736_v31 }
  0x3f   : > { %754 = vmatprep.subr.msk.bf16.mxu1 %vm737_vm5, %v736_v31 }
  0x41   : > { %741 = vmatpush3.bf16.msk.msra.mxu0 %vm737_vm5, %v736_v31  ;;  %762 = vmatpush3.bf16.msk.msra.mxu1 %vm737_vm5, %v736_v31 }
  0x42   : > { %383 = vxpose.xlu0.b32.cont [8/16] (narrow) %v363_v40, 32  ;;  %744 = vmatprep.subr.msk.bf16.mxu0 %vm743_vm8, %v742_v4 }
  0x43   : > { %755 = vmatprep.subr.msk.bf16.mxu1 %vm743_vm8, %v742_v4 }
  0x45   : > { %747 = vmatpush3.bf16.msk.msra.mxu0 %vm743_vm8, %v742_v4  ;;  %763 = vmatpush3.bf16.msk.msra.mxu1 %vm743_vm8, %v742_v4 }
  0x46   : > { %384 = vxpose.xlu0.b32.cont [9/16] (narrow) %v364_v41, 32 }
  0x4a   : > { %385 = vxpose.xlu0.b32.cont [10/16] (narrow) %v365_v42, 32 }
  0x4e   : > { %386 = vxpose.xlu0.b32.cont [11/16] (narrow) %v366_v43, 32 }
  0x52   : > { %387 = vxpose.xlu0.b32.cont [12/16] (narrow) %v367_v44, 32 }
  0x56   : > { %388 = vxpose.xlu0.b32.cont [13/16] (narrow) %v368_v45, 32 }
  0x5a   : > { %389 = vxpose.xlu0.b32.cont [14/16] (narrow) %v369_v46, 32 }
  0x5e   : > { %390 = vxpose.xlu0.b32.cont [15/16] (narrow) %v370_v47, 32 }
  0x62   : > { %391 = vxpose.xlu0.b32.end [16/16] (narrow) %v371_v48, 32 }
  0xa6   : > { %v392_v49 = vpop.trf.xlu0 }
  0xa7   : > { %694 = vmatprep.mubr.f32.mxu0 %v392_v49 }
  0xaa   : > { %v393_v50 = vpop.trf.xlu0 }
  0xab   : > { %695 = vmatmul.mubr.f32.vlgmr.msra.gmra.mrb[0].mxu0 %v393_v50 }
  0xae   : > { %v394_v51 = vpop.trf.xlu0 }
  0xaf   : > { %697 = vmatprep.mubr.f32.mxu1 %v394_v51 }
  0xb2   : > { %v395_v52 = vpop.trf.xlu0 }
  0xb3   : > { %698 = vmatmul.mubr.f32.vlgmr.msra.gmra.mrb[0].mxu1 %v395_v52 }
 0x17e   : > { %v696_v55 = vpop.f32.mrb[0].mxu0 }
 0x17f   : > { %v494_v56 = vadd.f32 %v696_v55, %v373_v53  ;;  %v474_v57 = vpop.f32.mrb[1].mxu0 }
 0x180   : > { %v493_v58 = vadd.f32 %v474_v57, %v372_v54 }
 0x181   : > { %499 = vst.msk [vmem:[%s1037_s18 + $0x8] sm:$0xff] %vm497_vm9, %v494_v56 }
 0x182   : > { %498 = vst.msk [vmem:[%s1037_s18] sm:$0xff] %vm497_vm9, %v493_v58 }
 0x186   : > { %v699_v61 = vpop.f32.mrb[0].mxu1 }
 0x187   : > { %v496_v62 = vadd.f32 %v699_v61, %v375_v59  ;;  %v484_v63 = vpop.f32.mrb[1].mxu1 }
 0x188   : > { %v495_v0 = vadd.f32 %v484_v63, %v374_v60 }
 0x189   : > { %501 = vst.msk [vmem:[%s1037_s18 + $0x18] sm:$0xff] %vm497_vm9, %v496_v62 }
 0x18a   : > { %500 = vst.msk [vmem:[%s1037_s18 + $0x10] sm:$0xff] %vm497_vm9, %v495_v0 }
 0x18b   : > { %851 = shalt.err (!%p848_p7)
}
 0x18c   : > { %s852_s26 = scalar_lea.hbm %s1299_s29, 512  ;;  %s856_s8 = scalar_lea.hbm %s1363_s2, 1024 }
 0x18d   : > { %p853_p8 = scmp.ne.s32.totalorder %s1299_s29, %s852_s26  ;;  %p857_p12 = scmp.lt.u32.totalorder %s1299_s29, %s1363_s2 }
 0x18e   : > { %p858_p13 = scmp.lt.u32.totalorder %s856_s8, %s852_s26  ;;  %p860_p1 = scmp.lt.u32.totalorder %s852_s26, %s1299_s29 }
 0x18f   : > { %p854_p10 = pnand %p853_p8, %p1002_p3 }
 0x190   : > { %p859_p0 = por %p858_p13, %p857_p12 }
 0x191   : > { %p855_p11 = pneg %p854_p10 }
 0x192   : > { %p861_p2 = por %p860_p1, %p859_p0 }
 0x194   : > { %p862_p4 = pnand %p861_p2, %p855_p11 }
 0x196   : > { %865 = shalt.err (!%p862_p4)
}
 0x197   : > { %s936_s12 = smov 128   ;;  %s937_s23 = smov 8  }
 0x198   : > { %764 = dma.vmem_to_hbm [thread:$0]  (%p1002_p3), %s1301_s24, 512, %s1299_s29, %s1309_s13, %s936_s12, %s936_s12, %s937_s23  }
 0x199 PF: > { %p770_p5 = scmp.ge.s32.totalorder %s932_s16, 2  ;;  %s531_s27 = sand.u32 1, %s904_s9  }
 0x19a   : > { %s532_s28 = scalar_lea.sflag [#allocation3], %s531_s27 }
 0x19b   : > { %p767_p6 = pnand %p770_p5, %p1012_p9 }
 0x19d   : > { %899 = dma.done.wait (!%p767_p6), %s532_s28, 512  }
 0x19e   : > { %901 = vsyncadd (!%p767_p6), %s532_s28, 4294966784  ;;  %s15_s16 = sadd.s32 1, %s932_s16   ;;  %s1378_s9 = smov %s908_s10 }
 0x19f   : > { %p12_p7 = scmp.ge.s32.totalorder %s15_s16, 6   ;;  %s1379_s10 = smov %s912_s11 }
 0x1a0   : > { %s1380_s11 = smov %s1020_s25  ;;  %s1381_s12 = smov %s924_s14 }
 0x1a1   : > { %s1382_s13 = smov %s928_s15  ;;  %s1383_s14 = smov %s1386_s19 }
 0x1a2   : > { %s1384_s15 = smov %s1390_s20  ;;  %14 = sbr.rel (!%p12_p7) target bundleno = 5 (0x5), region = 70 }
 0x1a9   :  { %537 = vsyncpa [#allocation3], 1 }
 0x1aa   :  { %539 = vsyncpa [#allocation3 + $0x1], 1 }

</bundles_post_ra>
